<compile_context>
chip_gen: v7x
topology: tpu7x:2x2x1
jax: 0.10.0
libtpu: 0.0.40
codegen_flags: <defaults>
</compile_context>

<pallas_src>
import jax
import jax.numpy as jnp
from jax.experimental import pallas as pl
from jax.experimental.pallas import tpu as pltpu


# TODO(synk): the transformer backbone (`self.model`) is an external,
# unspecified HF model; only its output interface (last_hidden_state) is
# reproduced here via a deterministic embedding-lookup stub.

_LANE = 128  # TPU lane width; pad num_labels to this for lane-dense stores.


def _round_up(x, m):
    return ((x + m - 1) // m) * m


def _vmem_capacity_bytes():
    """Physical VMEM per TensorCore (128 MiB on v5e/v6e, 64 MiB on v7x)."""
    try:
        return int(pltpu.get_tpu_info().vmem_capacity_bytes)
    except Exception:
        return 64 << 20  # conservative default == v7x per-core VMEM


def _linear_head_kernel(h_ref, w_ref, b_ref, o_ref):
    # h_ref: [TM, H]  bf16 tile of tokens (streamed, double-buffered)
    # w_ref: [H,  Lp] bf16 resident, lane-padded weight
    # b_ref: [1,  Lp] f32  resident, lane-padded bias
    # o_ref: [TM, Lp] f32
    acc = jnp.dot(h_ref[...], w_ref[...], preferred_element_type=jnp.float32)
    o_ref[...] = acc + b_ref[...]


def prepare_head_params(weight, bias):
    """One-time (per-model) prep: lane-pad and cast the linear head params.

    weight: [H, L] f32, bias: [L] f32
    -> (w_p [H, Lp] bf16, b_p [1, Lp] f32, L)
    """
    H, L = weight.shape
    Lp = _round_up(L, _LANE)
    w_p = jnp.pad(weight, ((0, 0), (0, Lp - L))) if Lp != L else weight
    b_p = jnp.pad(bias, (0, Lp - L)) if Lp != L else bias
    return w_p.astype(jnp.bfloat16), b_p.reshape(1, Lp).astype(jnp.float32), L


def _pick_tm(M, H, Lp, n_weight_bufs, vmem_cap):
    """Largest token-tile (multiple of 8) whose pipelined budget fits VMEM."""
    budget = int(vmem_cap * 0.75) - (2 << 20)          # headroom for compiler
    fixed = n_weight_bufs * (H * Lp * 2 + Lp * 4)       # bf16 weight + f32 bias
    tm = 8
    for cand in (2048, 1536, 1024, 768, 512, 384, 256, 128, 64, 32, 16, 8):
        # double-buffered bf16 hidden tile + double-buffered f32 output tile
        per_tile = 2 * cand * H * 2 + 2 * cand * Lp * 4
        if fixed + per_tile <= budget:
            tm = cand
            break
    return min(tm, _round_up(M, 8))


def linear_head_pallas(hidden, w_p, b_p, num_labels):
    """hidden: [B, S, H], w_p: [H, Lp] bf16, b_p: [1, Lp] f32 -> [B, S, L] f32."""
    B, S, H = hidden.shape
    Lp = w_p.shape[1]
    L = num_labels
    M = B * S

    # bf16 at the kernel boundary halves the dominant HBM stream; accumulation
    # stays f32 inside the kernel.
    h2d = hidden.reshape(M, H).astype(jnp.bfloat16)

    vmem_cap = _vmem_capacity_bytes()

    def build_and_run(single_buffer_weights):
        n_wbuf = 1 if single_buffer_weights else 2
        TM = _pick_tm(M, H, Lp, n_wbuf, vmem_cap)
        grid = (pl.cdiv(M, TM),)  # ragged last tile: no wrapper-side row pad

        vmem_need = (2 * TM * H * 2 + 2 * TM * Lp * 4
                     + n_wbuf * (H * Lp * 2 + Lp * 4) + (2 << 20))
        vmem_limit = int(min(max(vmem_need, 4 << 20), int(vmem_cap * 0.75)))

        wb_kwargs = (
            {"pipeline_mode": pl.Buffered(1)} if single_buffer_weights else {}
        )
        in_specs = [
            pl.BlockSpec((TM, H), lambda i: (i, 0)),               # streamed tokens
            pl.BlockSpec((H, Lp), lambda i: (0, 0), **wb_kwargs),  # resident weight
            pl.BlockSpec((1, Lp), lambda i: (0, 0), **wb_kwargs),  # resident bias
        ]
        out_spec = pl.BlockSpec((TM, Lp), lambda i: (i, 0))

        return pl.pallas_call(
            _linear_head_kernel,
            out_shape=jax.ShapeDtypeStruct((M, Lp), jnp.float32),
            grid=grid,
            in_specs=in_specs,
            out_specs=out_spec,
            compiler_params=pltpu.CompilerParams(
                dimension_semantics=("parallel",),
                vmem_limit_bytes=vmem_limit,
            ),
            cost_estimate=pl.CostEstimate(
                flops=2 * M * H * Lp,
                transcendentals=0,
                bytes_accessed=2 * M * H + 2 * H * Lp + 4 * Lp + 4 * M * Lp,
            ),
        )(h2d, w_p, b_p)

    try:
        out = build_and_run(True)   # single-buffered resident weight/bias
    except Exception:
        out = build_and_run(False)  # fallback: default double buffering

    # Drop lane padding (padded columns are exact zeros) and restore [B, S, L].
    return out[:, :L].reshape(B, S, L)


def f25net_forward(input_ids, embed_table, head_w_p, head_b_p, num_labels):
    """Mimics F25Net.forward (inference path, no labels / no loss).

    Returns a dict with 'logits' (squeezed) and 'last_hidden_state'.
    """
    # ---- backbone stub (plain JAX glue): deterministic embedding lookup ----
    last_hidden_state = embed_table[input_ids]                       # [B, S, H]

    # ---- classification head: Pallas kernel ----
    logits = linear_head_pallas(last_hidden_state, head_w_p, head_b_p,
                                num_labels)                          # [B, S, L]

    # torch's .squeeze(): drop all size-1 dims
    squeeze_axes = tuple(i for i, d in enumerate(logits.shape) if d == 1)
    logits_sq = jnp.squeeze(logits, axis=squeeze_axes) if squeeze_axes else logits

    return {"logits": logits_sq, "last_hidden_state": last_hidden_state}


if __name__ == "__main__":
    # Small shapes consistent with the module's forward pass.
    B, S = 2, 8              # batch, sequence length
    H = 32                   # model.config.hidden_size
    L = 4                    # num_labels
    VOCAB = 64

    key = jax.random.PRNGKey(0)
    k_ids, k_emb, k_w, k_b = jax.random.split(key, 4)

    input_ids = jax.random.randint(k_ids, (B, S), 0, VOCAB, dtype=jnp.int32)
    embed_table = jax.random.normal(k_emb, (VOCAB, H), dtype=jnp.float32) * 0.02

    # nn.Linear(H, L): weight [L, H], bias [L], uniform(-1/sqrt(H), 1/sqrt(H)).
    bound = 1.0 / (H ** 0.5)
    lin_w_torch = jax.random.uniform(k_w, (L, H), jnp.float32, -bound, bound)
    lin_b = jax.random.uniform(k_b, (L,), jnp.float32, -bound, bound)
    lin_w = lin_w_torch.T                                            # [H, L]

    # Hoisted (one-time) lane padding + bf16 cast of the head params.
    w_p, b_p, num_labels = prepare_head_params(lin_w, lin_b)

    out = f25net_forward(input_ids, embed_table, w_p, b_p, num_labels)
    logits = jax.block_until_ready(out["logits"])

    # Reference check in plain JAX (f32); looser tolerance for bf16 inputs.
    ref = embed_table[input_ids] @ lin_w + lin_b
    assert logits.shape == (B, S, L), logits.shape
    assert jnp.allclose(logits, ref, atol=1e-2, rtol=1e-2), (
        float(jnp.max(jnp.abs(logits - ref))))

    print("KERNEL_OK")
</pallas_src>

<mosaic_0001>
module attributes {stable_mosaic.version = 11 : i64} {
  func.func @_linear_head_kernel(%arg0: i32, %arg1: memref<16x32xbf16, #tpu.memory_space<vmem>>, %arg2: memref<32x128xbf16, #tpu.memory_space<vmem>>, %arg3: memref<1x128xf32, #tpu.memory_space<vmem>>, %arg4: memref<16x128xf32, #tpu.memory_space<vmem>>) attributes {dimension_semantics = [#tpu.dimension_semantics<parallel>], iteration_bounds = array<i64: 1>, scalar_prefetch = 0 : i64, scratch_operands = 0 : i64, tpu.core_type = #tpu.core_type<tc>, window_params = [{transform_indices = @transform_0, window_bounds = array<i64: 16, 32>}, {pipeline_mode = #tpu.pipeline_mode<synchronous>, transform_indices = @transform_1, window_bounds = array<i64: 32, 128>}, {pipeline_mode = #tpu.pipeline_mode<synchronous>, transform_indices = @transform_2, window_bounds = array<i64: 1, 128>}, {transform_indices = @transform_3, window_bounds = array<i64: 16, 128>}]} {
    %c0 = arith.constant 0 : index
    %c0_0 = arith.constant 0 : index
    %0 = vector.load %arg1[%c0, %c0_0] : memref<16x32xbf16, #tpu.memory_space<vmem>>, vector<16x32xbf16>
    %c0_1 = arith.constant 0 : index
    %c0_2 = arith.constant 0 : index
    %1 = vector.load %arg2[%c0_1, %c0_2] : memref<32x128xbf16, #tpu.memory_space<vmem>>, vector<32x128xbf16>
    %cst = arith.constant dense<0.000000e+00> : vector<16x128xf32>
    %2 = tpu.matmul %0, %1, %cst {dimension_numbers = #tpu.dot_dimension_numbers<[1], [0], [0], [1], [0, 0, 1, 1], [], []>} : vector<16x32xbf16>, vector<32x128xbf16>, vector<16x128xf32> -> vector<16x128xf32>
    %c0_3 = arith.constant 0 : index
    %c0_4 = arith.constant 0 : index
    %3 = vector.load %arg3[%c0_3, %c0_4] : memref<1x128xf32, #tpu.memory_space<vmem>>, vector<1x128xf32>
    %4 = vector.broadcast %3 : vector<1x128xf32> to vector<16x128xf32>
    %5 = arith.addf %2, %4 : vector<16x128xf32>
    %c0_5 = arith.constant 0 : index
    %c0_6 = arith.constant 0 : index
    %6 = vector.load %arg4[%c0_5, %c0_6] : memref<16x128xf32, #tpu.memory_space<vmem>>, vector<16x128xf32>
    tpu.vector_store %arg4[%c0_5, %c0_6], %5 {strides = array<i32>} : memref<16x128xf32, #tpu.memory_space<vmem>>, vector<16x128xf32>,
    return
  }
  func.func @transform_0(%arg0: i32) -> (i32, i32) {
    %c0_i32 = arith.constant 0 : i32
    %c0_i32_0 = arith.constant 0 : i32
    return %arg0, %c0_i32 : i32, i32
  }
  func.func @transform_1(%arg0: i32) -> (i32, i32) {
    %c0_i32 = arith.constant 0 : i32
    %c0_i32_0 = arith.constant 0 : i32
    %c0_i32_1 = arith.constant 0 : i32
    return %c0_i32, %c0_i32_0 : i32, i32
  }
  func.func @transform_2(%arg0: i32) -> (i32, i32) {
    %c0_i32 = arith.constant 0 : i32
    %c0_i32_0 = arith.constant 0 : i32
    %c0_i32_1 = arith.constant 0 : i32
    return %c0_i32, %c0_i32_0 : i32, i32
  }
  func.func @transform_3(%arg0: i32) -> (i32, i32) {
    %c0_i32 = arith.constant 0 : i32
    %c0_i32_0 = arith.constant 0 : i32
    return %arg0, %c0_i32 : i32, i32
  }
}

module attributes {stable_mosaic.version = 11 : i64} {
  func.func @_linear_head_kernel(%arg0: i32, %arg1: memref<16x32xbf16, #tpu.memory_space<vmem>>, %arg2: memref<32x128xbf16, #tpu.memory_space<vmem>>, %arg3: memref<1x128xf32, #tpu.memory_space<vmem>>, %arg4: memref<16x128xf32, #tpu.memory_space<vmem>>) attributes {dimension_semantics = [#tpu.dimension_semantics<parallel>], iteration_bounds = array<i64: 1>, scalar_prefetch = 0 : i64, scratch_operands = 0 : i64, tpu.core_type = #tpu.core_type<tc>, window_params = [{transform_indices = @transform_0, window_bounds = array<i64: 16, 32>}, {pipeline_mode = #tpu.pipeline_mode<synchronous>, transform_indices = @transform_1, window_bounds = array<i64: 32, 128>}, {pipeline_mode = #tpu.pipeline_mode<synchronous>, transform_indices = @transform_2, window_bounds = array<i64: 1, 128>}, {transform_indices = @transform_3, window_bounds = array<i64: 16, 128>}]} {
    %c0 = arith.constant 0 : index
    %c0_0 = arith.constant 0 : index
    %0 = vector.load %arg1[%c0, %c0_0] : memref<16x32xbf16, #tpu.memory_space<vmem>>, vector<16x32xbf16>
    %c0_1 = arith.constant 0 : index
    %c0_2 = arith.constant 0 : index
    %1 = vector.load %arg2[%c0_1, %c0_2] : memref<32x128xbf16, #tpu.memory_space<vmem>>, vector<32x128xbf16>
    %cst = arith.constant dense<0.000000e+00> : vector<16x128xf32>
    %2 = tpu.matmul %0, %1, %cst {dimension_numbers = #tpu.dot_dimension_numbers<[1], [0], [0], [1], [0, 0, 1, 1], [], []>} : vector<16x32xbf16>, vector<32x128xbf16>, vector<16x128xf32> -> vector<16x128xf32>
    %c0_3 = arith.constant 0 : index
    %c0_4 = arith.constant 0 : index
    %3 = vector.load %arg3[%c0_3, %c0_4] : memref<1x128xf32, #tpu.memory_space<vmem>>, vector<1x128xf32>
    %4 = vector.broadcast %3 : vector<1x128xf32> to vector<16x128xf32>
    %5 = arith.addf %2, %4 : vector<16x128xf32>
    %c0_5 = arith.constant 0 : index
    %c0_6 = arith.constant 0 : index
    %6 = vector.load %arg4[%c0_5, %c0_6] : memref<16x128xf32, #tpu.memory_space<vmem>>, vector<16x128xf32>
    tpu.vector_store %arg4[%c0_5, %c0_6], %5 {strides = array<i32>} : memref<16x128xf32, #tpu.memory_space<vmem>>, vector<16x128xf32>,
    return
  }
  func.func @transform_0(%arg0: i32) -> (i32, i32) {
    %c0_i32 = arith.constant 0 : i32
    %c0_i32_0 = arith.constant 0 : i32
    return %arg0, %c0_i32 : i32, i32
  }
  func.func @transform_1(%arg0: i32) -> (i32, i32) {
    %c0_i32 = arith.constant 0 : i32
    %c0_i32_0 = arith.constant 0 : i32
    %c0_i32_1 = arith.constant 0 : i32
    return %c0_i32, %c0_i32_0 : i32, i32
  }
  func.func @transform_2(%arg0: i32) -> (i32, i32) {
    %c0_i32 = arith.constant 0 : i32
    %c0_i32_0 = arith.constant 0 : i32
    %c0_i32_1 = arith.constant 0 : i32
    return %c0_i32, %c0_i32_0 : i32, i32
  }
  func.func @transform_3(%arg0: i32) -> (i32, i32) {
    %c0_i32 = arith.constant 0 : i32
    %c0_i32_0 = arith.constant 0 : i32
    return %arg0, %c0_i32 : i32, i32
  }
}

</mosaic_0001>

<bundles_post_ra>
// kernel: tpu_custom_call.1
= control target key start
LH: loop header
LB: loop body
LE: loop exit
PB: predicated region body
PF: predicated region fallthrough
CT: control target
= control target key end

     0   :  { %8 = vsyncpa [#allocation3], 0  ;;  %s307_s0 = inlined_call_operand.hbm [shape: bf16[16,32], index: 0, kind: input, shape index: {}]   ;;  %s308_s1 = inlined_call_operand.hbm [shape: bf16[32,128], index: 1, kind: input, shape index: {}]   ;;  %s309_s2 = inlined_call_operand.vmem [shape: f32[1,128], index: 2, kind: input, shape index: {}]   ;;  %s310_s3 = inlined_call_operand.hbm [shape: f32[16,128], index: 3, kind: output, shape index: {}]  }
   0x1   :  { %9 = vsyncpa [#allocation6], 0 }
   0x2   :  { %10 = vsyncpa [#allocation4], 0  ;;  %s239_s12 = smov [#allocation2]   ;;  %s167_s16 = scalar_lea.hbm %s307_s0, 128 }
   0x3   :  { %s16_s13 = sshll.u32 %s239_s12, 4  ;;  %p168_p0 = scmp.ne.s32.totalorder %s307_s0, %s167_s16  ;;  %s17_s13 = int_to_ptr.vmem [resolvable:$true] %s16_s13 }
   0x4   :  { %p171_p1 = scmp.lt.u32.totalorder %s167_s16, %s307_s0 }
   0x6   :  { %p173_p2 = pnand %p171_p1, %p168_p0 }
   0x8   :  { %176 = shalt.err (!%p173_p2)
}
   0x9   :  { %s177_s21 = scalar_lea.vmem %s17_s13, 128  ;;  %p182_p4 = scmp.lt.s32.totalorder %s17_s13, %s17_s13 }
   0xa   :  { %p178_p3 = scmp.ne.s32.totalorder %s17_s13, %s177_s21  ;;  %p183_p5 = scmp.lt.s32.totalorder %s177_s21, %s177_s21 }
   0xc   :  { %p184_p6 = por %p183_p5, %p182_p4 }
   0xe   :  { %p185_p7 = pnand %p184_p6, %p178_p3 }
  0x10   :  { %188 = shalt.err (!%p185_p7)
}
  0x11   :  { %s240_s22 = smov 64   ;;  %s241_s23 = smov 4  }
  0x12   :  { %22 = dma.hbm_to_vmem [thread:$0]  %s307_s0, 128, %s17_s13, [#allocation3], %s240_s22, %s240_s22, %s241_s23  }
  0x13   :  { %s242_s26 = smov [#allocation5]   ;;  %s189_s30 = scalar_lea.hbm %s308_s1, 256 }
  0x14   :  { %s28_s27 = sshll.u32 %s242_s26, 4  ;;  %p190_p8 = scmp.ne.s32.totalorder %s308_s1, %s189_s30  ;;  %s29_s27 = int_to_ptr.vmem [resolvable:$true] %s28_s27 }
  0x15   :  { %p193_p9 = scmp.lt.u32.totalorder %s189_s30, %s308_s1 }
  0x17   :  { %p195_p10 = pnand %p193_p9, %p190_p8 }
  0x19   :  { %198 = shalt.err (!%p195_p10)
}
  0x1a   :  { %s199_s8 = scalar_lea.vmem %s29_s27, 256  ;;  %p204_p12 = scmp.lt.s32.totalorder %s29_s27, %s29_s27 }
  0x1b   :  { %p200_p11 = scmp.ne.s32.totalorder %s29_s27, %s199_s8  ;;  %p205_p13 = scmp.lt.s32.totalorder %s199_s8, %s199_s8 }
  0x1d   :  { %p206_p0 = por %p205_p13, %p204_p12 }
  0x1f   :  { %p207_p1 = pnand %p206_p0, %p200_p11 }
  0x21   :  { %210 = shalt.err (!%p207_p1)
}
  0x22   :  { %34 = dma.hbm_to_vmem [thread:$0]  %s308_s1, 256, %s29_s27, [#allocation6], %s240_s22, %s240_s22, %s241_s23  }
  0x23   :  { %233 = dma.done.wait [#allocation3], 128  }
  0x24   :  { %234 = vsyncadd [#allocation3], 4294967168 }
  0x25   :  { %235 = dma.done.wait [#allocation6], 256  }
  0x26   :  { %236 = vsyncadd [#allocation6], 4294967040  ;;  %v243_v0 = vmov 0.0   ;;  %vm244_vm0 = vmmov 0   ;;  %v164_v1 = vld [vmem:[#allocation5] sm:$0xff]   ;;  %v165_v2 = vld [vmem:[#allocation5 + $0x8] sm:$0xff]  }
  0x27   :  { %147 = vmatprep.subr.bf16.mxu0 %v243_v0  ;;  %151 = vmatprep.mubr.msk.bf16.mxu0 %vm244_vm0, %v243_v0  ;;  %v166_v3 = vld [vmem:[#allocation2] sm:$0xff]   ;;  %vm74_vm1 = vcmask 261120   ;;  %s245_s1 = smov [#allocation7]  }
  0x28   :  { %148 = vmatpush3.bf16.msra.mxu0 %v164_v1  ;;  %v139_v4 = vld [vmem:[%s309_s2] ss:$0 sm:$0xff]  ;;  %s126_s12 = sshll.u32 %s245_s1, 4  ;;  %s127_s12 = int_to_ptr.vmem [resolvable:$true] %s126_s12 }
  0x29   :  { %149 = vmatprep.subr.bf16.mxu0 %v243_v0  ;;  %s211_s13 = scalar_lea.vmem %s127_s12, 256  ;;  %p216_p3 = scmp.lt.s32.totalorder %s127_s12, %s127_s12 }
  0x2a   :  { %p212_p2 = scmp.ne.s32.totalorder %s127_s12, %s211_s13  ;;  %p217_p4 = scmp.lt.s32.totalorder %s211_s13, %s211_s13 }
  0x2c   :  { %150 = vmatpush3.bf16.msra.mxu0 %v165_v2  ;;  %p218_p5 = por %p217_p4, %p216_p3 }
  0x2e   :  { %p219_p6 = pnand %p218_p5, %p212_p2 }
  0x2f   :  { %152 = vmatmul.mubr.msk.bf16.vlgmr.msra.gmra.mrb[0].mxu0 %vm74_vm1, %v166_v3 }
 0x102   :  { %v112_v5 = vpop.f32.mrb[0].mxu0 }
 0x103   :  { %v113_v6 = vadd.f32 %v139_v4, %v112_v5  ;;  %v153_v7 = vpop.f32.mrb[1].mxu0 }
 0x104   :  { %v115_v8 = vpop.f32.mrb[2].mxu0 }
 0x105   :  { %119 = vst [vmem:[#allocation7] sm:$0xff] %v113_v6  ;;  %v116_v9 = vadd.f32 %v139_v4, %v115_v8  ;;  %v154_v10 = vpop.f32.mrb[3].mxu0 }
 0x107   :  { %120 = vst [vmem:[#allocation7 + $0x8] sm:$0xff] %v116_v9 }
 0x108   :  { %222 = shalt.err (!%p219_p6)
}
 0x109   :  { %s223_s15 = scalar_lea.hbm %s310_s3, 256 }
 0x10a   :  { %p224_p7 = scmp.ne.s32.totalorder %s310_s3, %s223_s15  ;;  %p227_p8 = scmp.lt.u32.totalorder %s223_s15, %s310_s3 }
 0x10c   :  { %p229_p9 = pnand %p227_p8, %p224_p7 }
 0x10e   :  { %232 = shalt.err (!%p229_p9)
}
 0x10f   :  { %s246_s20 = smov 128   ;;  %s247_s21 = smov 8  }
 0x110   :  { %132 = dma.vmem_to_hbm [thread:$0]  %s127_s12, 256, %s310_s3, [#allocation4], %s246_s20, %s246_s20, %s247_s21  }
 0x111   :  { %237 = dma.done.wait [#allocation4], 256  }
 0x112   :  { %238 = vsyncadd [#allocation4], 4294967040 }
 0x113   :  { %136 = vsyncpa [#allocation3], 1 }
 0x114   :  { %137 = vsyncpa [#allocation6], 1 }
 0x115   :  { %138 = vsyncpa [#allocation4], 1 }

// kernel: tpu_custom_call.1
= control target key start
LH: loop header
LB: loop body
LE: loop exit
PB: predicated region body
PF: predicated region fallthrough
CT: control target
= control target key end

     0   :  { %8 = vsyncpa [#allocation3], 0  ;;  %s307_s0 = inlined_call_operand.hbm [shape: bf16[16,32], index: 0, kind: input, shape index: {}]   ;;  %s308_s1 = inlined_call_operand.hbm [shape: bf16[32,128], index: 1, kind: input, shape index: {}]   ;;  %s309_s2 = inlined_call_operand.vmem [shape: f32[1,128], index: 2, kind: input, shape index: {}]   ;;  %s310_s3 = inlined_call_operand.hbm [shape: f32[16,128], index: 3, kind: output, shape index: {}]  }
   0x1   :  { %9 = vsyncpa [#allocation6], 0 }
   0x2   :  { %10 = vsyncpa [#allocation4], 0  ;;  %s239_s12 = smov [#allocation2]   ;;  %s167_s16 = scalar_lea.hbm %s307_s0, 128 }
   0x3   :  { %s16_s13 = sshll.u32 %s239_s12, 4  ;;  %p168_p0 = scmp.ne.s32.totalorder %s307_s0, %s167_s16  ;;  %s17_s13 = int_to_ptr.vmem [resolvable:$true] %s16_s13 }
   0x4   :  { %p171_p1 = scmp.lt.u32.totalorder %s167_s16, %s307_s0 }
   0x6   :  { %p173_p2 = pnand %p171_p1, %p168_p0 }
   0x8   :  { %176 = shalt.err (!%p173_p2)
}
   0x9   :  { %s177_s21 = scalar_lea.vmem %s17_s13, 128  ;;  %p182_p4 = scmp.lt.s32.totalorder %s17_s13, %s17_s13 }
   0xa   :  { %p178_p3 = scmp.ne.s32.totalorder %s17_s13, %s177_s21  ;;  %p183_p5 = scmp.lt.s32.totalorder %s177_s21, %s177_s21 }
   0xc   :  { %p184_p6 = por %p183_p5, %p182_p4 }
   0xe   :  { %p185_p7 = pnand %p184_p6, %p178_p3 }
  0x10   :  { %188 = shalt.err (!%p185_p7)
}
  0x11   :  { %s240_s22 = smov 64   ;;  %s241_s23 = smov 4  }
  0x12   :  { %22 = dma.hbm_to_vmem [thread:$0]  %s307_s0, 128, %s17_s13, [#allocation3], %s240_s22, %s240_s22, %s241_s23  }
  0x13   :  { %s242_s26 = smov [#allocation5]   ;;  %s189_s30 = scalar_lea.hbm %s308_s1, 256 }
  0x14   :  { %s28_s27 = sshll.u32 %s242_s26, 4  ;;  %p190_p8 = scmp.ne.s32.totalorder %s308_s1, %s189_s30  ;;  %s29_s27 = int_to_ptr.vmem [resolvable:$true] %s28_s27 }
  0x15   :  { %p193_p9 = scmp.lt.u32.totalorder %s189_s30, %s308_s1 }
  0x17   :  { %p195_p10 = pnand %p193_p9, %p190_p8 }
  0x19   :  { %198 = shalt.err (!%p195_p10)
}
  0x1a   :  { %s199_s8 = scalar_lea.vmem %s29_s27, 256  ;;  %p204_p12 = scmp.lt.s32.totalorder %s29_s27, %s29_s27 }
  0x1b   :  { %p200_p11 = scmp.ne.s32.totalorder %s29_s27, %s199_s8  ;;  %p205_p13 = scmp.lt.s32.totalorder %s199_s8, %s199_s8 }
  0x1d   :  { %p206_p0 = por %p205_p13, %p204_p12 }
  0x1f   :  { %p207_p1 = pnand %p206_p0, %p200_p11 }
  0x21   :  { %210 = shalt.err (!%p207_p1)
}
  0x22   :  { %34 = dma.hbm_to_vmem [thread:$0]  %s308_s1, 256, %s29_s27, [#allocation6], %s240_s22, %s240_s22, %s241_s23  }
  0x23   :  { %233 = dma.done.wait [#allocation3], 128  }
  0x24   :  { %234 = vsyncadd [#allocation3], 4294967168 }
  0x25   :  { %235 = dma.done.wait [#allocation6], 256  }
  0x26   :  { %236 = vsyncadd [#allocation6], 4294967040  ;;  %v243_v0 = vmov 0.0   ;;  %vm244_vm0 = vmmov 0   ;;  %v164_v1 = vld [vmem:[#allocation5] sm:$0xff]   ;;  %v165_v2 = vld [vmem:[#allocation5 + $0x8] sm:$0xff]  }
  0x27   :  { %147 = vmatprep.subr.bf16.mxu0 %v243_v0  ;;  %151 = vmatprep.mubr.msk.bf16.mxu0 %vm244_vm0, %v243_v0  ;;  %v166_v3 = vld [vmem:[#allocation2] sm:$0xff]   ;;  %vm74_vm1 = vcmask 261120   ;;  %s245_s1 = smov [#allocation7]  }
  0x28   :  { %148 = vmatpush3.bf16.msra.mxu0 %v164_v1  ;;  %v139_v4 = vld [vmem:[%s309_s2] ss:$0 sm:$0xff]  ;;  %s126_s12 = sshll.u32 %s245_s1, 4  ;;  %s127_s12 = int_to_ptr.vmem [resolvable:$true] %s126_s12 }
  0x29   :  { %149 = vmatprep.subr.bf16.mxu0 %v243_v0  ;;  %s211_s13 = scalar_lea.vmem %s127_s12, 256  ;;  %p216_p3 = scmp.lt.s32.totalorder %s127_s12, %s127_s12 }
  0x2a   :  { %p212_p2 = scmp.ne.s32.totalorder %s127_s12, %s211_s13  ;;  %p217_p4 = scmp.lt.s32.totalorder %s211_s13, %s211_s13 }
  0x2c   :  { %150 = vmatpush3.bf16.msra.mxu0 %v165_v2  ;;  %p218_p5 = por %p217_p4, %p216_p3 }
  0x2e   :  { %p219_p6 = pnand %p218_p5, %p212_p2 }
  0x2f   :  { %152 = vmatmul.mubr.msk.bf16.vlgmr.msra.gmra.mrb[0].mxu0 %vm74_vm1, %v166_v3 }
 0x102   :  { %v112_v5 = vpop.f32.mrb[0].mxu0 }
 0x103   :  { %v113_v6 = vadd.f32 %v139_v4, %v112_v5  ;;  %v153_v7 = vpop.f32.mrb[1].mxu0 }
 0x104   :  { %v115_v8 = vpop.f32.mrb[2].mxu0 }
 0x105   :  { %119 = vst [vmem:[#allocation7] sm:$0xff] %v113_v6  ;;  %v116_v9 = vadd.f32 %v139_v4, %v115_v8  ;;  %v154_v10 = vpop.f32.mrb[3].mxu0 }
 0x107   :  { %120 = vst [vmem:[#allocation7 + $0x8] sm:$0xff] %v116_v9 }
 0x108   :  { %222 = shalt.err (!%p219_p6)
}
 0x109   :  { %s223_s15 = scalar_lea.hbm %s310_s3, 256 }
 0x10a   :  { %p224_p7 = scmp.ne.s32.totalorder %s310_s3, %s223_s15  ;;  %p227_p8 = scmp.lt.u32.totalorder %s223_s15, %s310_s3 }
 0x10c   :  { %p229_p9 = pnand %p227_p8, %p224_p7 }
 0x10e   :  { %232 = shalt.err (!%p229_p9)
}
 0x10f   :  { %s246_s20 = smov 128   ;;  %s247_s21 = smov 8  }
 0x110   :  { %132 = dma.vmem_to_hbm [thread:$0]  %s127_s12, 256, %s310_s3, [#allocation4], %s246_s20, %s246_s20, %s247_s21  }
 0x111   :  { %237 = dma.done.wait [#allocation4], 256  }
 0x112   :  { %238 = vsyncadd [#allocation4], 4294967040 }
 0x113   :  { %136 = vsyncpa [#allocation3], 1 }
 0x114   :  { %137 = vsyncpa [#allocation6], 1 }
 0x115   :  { %138 = vsyncpa [#allocation4], 1 }

</bundles_post_ra>
